<compile_context>
chip_gen: v7x
topology: tpu7x:2x2x1
jax: 0.10.0
libtpu: 0.0.40
codegen_flags: <defaults>
</compile_context>

<pallas_src>
import functools

import numpy as np
import jax
import jax.numpy as jnp
from jax.experimental import pallas as pl
from jax.experimental.pallas import tpu as pltpu


def _round_up(x, m):
    return (x + m - 1) // m * m


def _k_plan(K):
    """Return (Kp, tk) with Kp % tk == 0 and (tk % 128 == 0 or tk == Kp)."""
    if K <= 1024:
        return K, K                       # single K step, full-extent block
    for t in (512, 384, 256, 128):
        if K % t == 0:
            return K, t
    Kp = _round_up(K, 128)                # generic fallback (unused for ResNet)
    return Kp, 128


# ---------------------------------------------------------------------------
# Fused GEMM + BN(scale,bias) + optional residual + optional ReLU kernel
# ---------------------------------------------------------------------------
def _fused_gemm_kernel(*refs, relu, has_residual):
    if has_residual:
        a_ref, b_ref, scale_ref, bias_ref, res_ref, o_ref, acc_ref = refs
    else:
        a_ref, b_ref, scale_ref, bias_ref, o_ref, acc_ref = refs
        res_ref = None

    k = pl.program_id(2)

    @pl.when(k == 0)
    def _():
        acc_ref[...] = jnp.zeros_like(acc_ref)

    acc_ref[...] += jnp.dot(a_ref[...], b_ref[...],
                            preferred_element_type=jnp.float32)

    @pl.when(k == pl.num_programs(2) - 1)
    def _():
        y = acc_ref[...] * scale_ref[...] + bias_ref[...]
        if has_residual:
            y = y + res_ref[...].astype(jnp.float32)
        if relu:
            y = jnp.maximum(y, 0.0)
        o_ref[...] = y.astype(o_ref.dtype)


def fused_gemm(a, b_p, scale_p, bias_p, *, residual=None, relu=False,
               out_dtype=jnp.bfloat16, tk=None):
    """out = maybe_relu((a @ b_p) * scale + bias [+ residual]).

    a:        [M, K]   (cast to bf16 here)
    b_p:      [Kp, Np] bf16, pre-padded (Np multiple of 128)
    scale_p:  [1, Np]  f32
    bias_p:   [1, Np]  f32
    residual: [M, N<=Np] or None (cast to bf16 / zero-padded here)
    Returns the padded [Mp, Np] result; callers slice back.
    """
    M, K = a.shape
    Kp, Np = b_p.shape
    if tk is None:
        Kp2, tk = _k_plan(K)
        assert Kp2 == Kp, (K, Kp, Kp2)
    assert Kp % tk == 0 and Np % 128 == 0

    # N tile: lane-dense, as wide as possible (<= 512).
    if Np <= 512:
        tn = Np
    elif Np % 512 == 0:
        tn = 512
    elif Np % 256 == 0:
        tn = 256
    else:
        tn = 128

    # M tile.
    tm = 256 if M >= 256 else _round_up(M, 8)
    Mp = _round_up(M, tm)

    a_bf = a.astype(jnp.bfloat16)
    if Kp != K:
        a_bf = jnp.pad(a_bf, ((0, 0), (0, Kp - K)))
    if Mp != M:
        a_bf = jnp.pad(a_bf, ((0, Mp - M), (0, 0)))

    has_residual = residual is not None
    operands = [a_bf, b_p, scale_p, bias_p]
    in_specs = [
        pl.BlockSpec((tm, tk), lambda i, j, k: (i, k)),
        pl.BlockSpec((tk, tn), lambda i, j, k: (k, j)),
        pl.BlockSpec((1, tn), lambda i, j, k: (0, j)),
        pl.BlockSpec((1, tn), lambda i, j, k: (0, j)),
    ]
    if has_residual:
        r = residual.astype(jnp.bfloat16)
        rM, rN = r.shape
        r = jnp.pad(r, ((0, Mp - rM), (0, Np - rN)))
        operands.append(r)
        in_specs.append(pl.BlockSpec((tm, tn), lambda i, j, k: (i, j)))

    grid = (Mp // tm, Np // tn, Kp // tk)

    out = pl.pallas_call(
        functools.partial(_fused_gemm_kernel, relu=relu,
                          has_residual=has_residual),
        out_shape=jax.ShapeDtypeStruct((Mp, Np), out_dtype),
        grid_spec=pltpu.PrefetchScalarGridSpec(
            num_scalar_prefetch=0,
            grid=grid,
            in_specs=in_specs,
            out_specs=pl.BlockSpec((tm, tn), lambda i, j, k: (i, j)),
            scratch_shapes=[pltpu.VMEM((tm, tn), jnp.float32)],
        ),
        compiler_params=pltpu.CompilerParams(
            dimension_semantics=("parallel", "parallel", "arbitrary")),
    )(*operands)
    return out


# ---------------------------------------------------------------------------
# Conv glue (im2col, bf16) + block / network composition
# ---------------------------------------------------------------------------
def _im2col_3x3(x, stride):
    """x: [B, H, W, C] NHWC, pad=1, kernel=3 -> ([B*Ho*Wo, 9*C], (B, Ho, Wo))."""
    B, H, W, C = x.shape
    Ho = (H - 1) // stride + 1
    Wo = (W - 1) // stride + 1
    xp = jnp.pad(x, ((0, 0), (1, 1), (1, 1), (0, 0)))
    cols = []
    for dh in range(3):
        for dw in range(3):
            cols.append(xp[:, dh:dh + (Ho - 1) * stride + 1:stride,
                           dw:dw + (Wo - 1) * stride + 1:stride, :])
    patches = jnp.concatenate(cols, axis=-1)          # [B, Ho, Wo, 9*C]
    return patches.reshape(B * Ho * Wo, 9 * C), (B, Ho, Wo)


def conv3x3_bn(x, w_p, scale_p, bias_p, n_out, *, stride, relu, residual=None):
    a, (B, Ho, Wo) = _im2col_3x3(x, stride)
    res = None
    if residual is not None:
        res = residual.reshape(B * Ho * Wo, residual.shape[-1])
    y = fused_gemm(a, w_p, scale_p, bias_p, residual=res, relu=relu)
    M = B * Ho * Wo
    return y[:M, :n_out].reshape(B, Ho, Wo, n_out)


def conv1x1_bn(x, w_p, scale_p, bias_p, n_out, *, stride):
    xs = x[:, ::stride, ::stride, :]
    B, Ho, Wo, C = xs.shape
    y = fused_gemm(xs.reshape(B * Ho * Wo, C), w_p, scale_p, bias_p, relu=False)
    return y[:B * Ho * Wo, :n_out].reshape(B, Ho, Wo, n_out)


def basic_block(x, blk):
    s = blk['stride']
    y = conv3x3_bn(x, *blk['conv1'], stride=s, relu=True)
    if 'shortcut' in blk:
        sc = conv1x1_bn(x, *blk['shortcut'], stride=s)
    else:
        sc = x
    # second conv: BN + residual add + ReLU fused into the GEMM epilogue
    return conv3x3_bn(y, *blk['conv2'], stride=1, relu=True, residual=sc)


def resnet_forward(params, x_nchw):
    x = jnp.transpose(x_nchw, (0, 2, 3, 1)).astype(jnp.bfloat16)  # NCHW -> NHWC
    x = conv3x3_bn(x, *params['stem'], stride=1, relu=True)
    for blocks in params['layers']:
        for blk in blocks:
            x = basic_block(x, blk)

    # AdaptiveAvgPool2d((1,1)) + Linear folded into one fused GEMM:
    #   logits = (1/HW) * sum_hw x @ W + b  ==  x.reshape(B, HW*C) @ tile(W)/HW + b
    B, H, W, C = x.shape
    HW = H * W
    fc_w, fc_b = params['fc']                       # (512, n_cls) f32, (n_cls,) f32
    n_cls = fc_w.shape[1]
    Np = _round_up(n_cls, 128)
    w_tiled = (jnp.tile(fc_w, (HW, 1)) / float(HW)).astype(jnp.bfloat16)
    w_p = jnp.pad(w_tiled, ((0, 0), (0, Np - n_cls)))
    scale_p = jnp.ones((1, Np), jnp.float32)
    bias_p = jnp.pad(fc_b, (0, Np - n_cls)).reshape(1, Np)
    a = x.reshape(B, HW * C)
    logits = fused_gemm(a, w_p, scale_p, bias_p, relu=False,
                        out_dtype=jnp.float32, tk=HW * C)   # single K step
    return logits[:B, :n_cls]


# ---------------------------------------------------------------------------
# Deterministic parameter init (shapes follow the PyTorch module __init__).
# Padding + bf16 casts are hoisted here, off the forward path.
# ---------------------------------------------------------------------------
def _init_conv_bn(key, kh, kw, cin, cout):
    k = jax.random.split(key, 5)
    fan_in = kh * kw * cin
    w = jax.random.normal(k[0], (kh, kw, cin, cout), jnp.float32) / np.sqrt(fan_in)
    gamma = 1.0 + 0.1 * jax.random.normal(k[1], (cout,), jnp.float32)
    beta = 0.1 * jax.random.normal(k[2], (cout,), jnp.float32)
    rmean = 0.1 * jax.random.normal(k[3], (cout,), jnp.float32)
    rvar = 1.0 + 0.1 * jnp.abs(jax.random.normal(k[4], (cout,), jnp.float32))
    scale = gamma / jnp.sqrt(rvar + 1e-5)       # eval-mode BN folded
    bias = beta - rmean * scale

    K = fan_in
    Kp, _ = _k_plan(K)
    Np = _round_up(cout, 128)
    w_flat = w.reshape(K, cout).astype(jnp.bfloat16)
    w_p = jnp.zeros((Kp, Np), jnp.bfloat16).at[:K, :cout].set(w_flat)
    scale_p = jnp.zeros((1, Np), jnp.float32).at[0, :cout].set(scale)
    bias_p = jnp.zeros((1, Np), jnp.float32).at[0, :cout].set(bias)
    return (w_p, scale_p, bias_p, cout)


def init_resnet18_params(key, num_block=(2, 2, 2, 2), num_classes=10):
    keys = iter(jax.random.split(key, 64))
    params = {'stem': _init_conv_bn(next(keys), 3, 3, 3, 64)}
    in_c = 64
    layers = []
    for out_c, nb, first_stride in zip((64, 128, 256, 512), num_block,
                                       (1, 2, 2, 2)):
        strides = [first_stride] + [1] * (nb - 1)
        blocks = []
        for s in strides:
            blk = {
                'stride': s,
                'conv1': _init_conv_bn(next(keys), 3, 3, in_c, out_c),
                'conv2': _init_conv_bn(next(keys), 3, 3, out_c, out_c),
            }
            if s != 1 or in_c != out_c:   # BasicBlock.expansion == 1
                blk['shortcut'] = _init_conv_bn(next(keys), 1, 1, in_c, out_c)
            blocks.append(blk)
            in_c = out_c
        layers.append(blocks)
    params['layers'] = layers
    fc_w = jax.random.normal(next(keys), (512, num_classes), jnp.float32) / np.sqrt(512)
    fc_b = 0.1 * jax.random.normal(next(keys), (num_classes,), jnp.float32)
    params['fc'] = (fc_w, fc_b)
    return params


if __name__ == "__main__":
    key = jax.random.PRNGKey(0)
    pkey, xkey = jax.random.split(key)
    params = init_resnet18_params(pkey, num_block=(2, 2, 2, 2), num_classes=10)

    # small NCHW input, same convention as the PyTorch module
    x = jax.random.normal(xkey, (2, 3, 16, 16), jnp.float32)

    logits = resnet_forward(params, x)
    logits = jax.block_until_ready(logits)
    assert logits.shape == (2, 10)
    assert bool(jnp.all(jnp.isfinite(logits)))
    print("KERNEL_OK")
</pallas_src>

<mosaic_0001>
module attributes {stable_mosaic.version = 11 : i64} {
  func.func @_fused_gemm_kernel(%arg0: i32, %arg1: i32, %arg2: i32, %arg3: memref<256x27xbf16, #tpu.memory_space<vmem>>, %arg4: memref<27x128xbf16, #tpu.memory_space<vmem>>, %arg5: memref<1x128xf32, #tpu.memory_space<vmem>>, %arg6: memref<1x128xf32, #tpu.memory_space<vmem>>, %arg7: memref<256x128xbf16, #tpu.memory_space<vmem>>, %arg8: memref<256x128xf32, #tpu.memory_space<vmem>>) attributes {dimension_semantics = [#tpu.dimension_semantics<parallel>, #tpu.dimension_semantics<parallel>, #tpu.dimension_semantics<arbitrary>], iteration_bounds = array<i64: 2, 1, 1>, scalar_prefetch = 0 : i64, scratch_operands = 1 : i64, tpu.core_type = #tpu.core_type<tc>, window_params = [{transform_indices = @transform_0, window_bounds = array<i64: 256, 27>}, {transform_indices = @transform_1, window_bounds = array<i64: 27, 128>}, {transform_indices = @transform_2, window_bounds = array<i64: 1, 128>}, {transform_indices = @transform_3, window_bounds = array<i64: 1, 128>}, {transform_indices = @transform_4, window_bounds = array<i64: 256, 128>}]} {
    %c0_i32 = arith.constant 0 : i32
    %0 = arith.cmpi eq, %arg2, %c0_i32 : i32
    %1 = arith.extui %0 : i1 to i32
    %c0_i32_0 = arith.constant 0 : i32
    %2 = arith.cmpi ne, %1, %c0_i32_0 : i32
    scf.if %2 {
      %cst_10 = arith.constant 0.000000e+00 : f32
      %12 = vector.broadcast %cst_10 : f32 to vector<256x128xf32>
      %c0_11 = arith.constant 0 : index
      %c0_12 = arith.constant 0 : index
      %13 = vector.load %arg8[%c0_11, %c0_12] : memref<256x128xf32, #tpu.memory_space<vmem>>, vector<256x128xf32>
      tpu.vector_store %arg8[%c0_11, %c0_12], %12 {strides = array<i32>} : memref<256x128xf32, #tpu.memory_space<vmem>>, vector<256x128xf32>,
    } else {
    }
    %c0 = arith.constant 0 : index
    %c0_1 = arith.constant 0 : index
    %3 = vector.load %arg8[%c0, %c0_1] : memref<256x128xf32, #tpu.memory_space<vmem>>, vector<256x128xf32>
    %c0_2 = arith.constant 0 : index
    %c0_3 = arith.constant 0 : index
    %4 = vector.load %arg3[%c0_2, %c0_3] : memref<256x27xbf16, #tpu.memory_space<vmem>>, vector<256x27xbf16>
    %c0_4 = arith.constant 0 : index
    %c0_5 = arith.constant 0 : index
    %5 = vector.load %arg4[%c0_4, %c0_5] : memref<27x128xbf16, #tpu.memory_space<vmem>>, vector<27x128xbf16>
    %cst = arith.constant dense<0.000000e+00> : vector<256x128xf32>
    %6 = tpu.matmul %4, %5, %cst {dimension_numbers = #tpu.dot_dimension_numbers<[1], [0], [0], [1], [0, 0, 1, 1], [], []>} : vector<256x27xbf16>, vector<27x128xbf16>, vector<256x128xf32> -> vector<256x128xf32>
    %7 = arith.addf %3, %6 : vector<256x128xf32>
    %c0_6 = arith.constant 0 : index
    %c0_7 = arith.constant 0 : index
    %8 = vector.load %arg8[%c0_6, %c0_7] : memref<256x128xf32, #tpu.memory_space<vmem>>, vector<256x128xf32>
    tpu.vector_store %arg8[%c0_6, %c0_7], %7 {strides = array<i32>} : memref<256x128xf32, #tpu.memory_space<vmem>>, vector<256x128xf32>,
    %c0_i32_8 = arith.constant 0 : i32
    %9 = arith.cmpi eq, %arg2, %c0_i32_8 : i32
    %10 = arith.extui %9 : i1 to i32
    %c0_i32_9 = arith.constant 0 : i32
    %11 = arith.cmpi ne, %10, %c0_i32_9 : i32
    scf.if %11 {
      %c0_10 = arith.constant 0 : index
      %c0_11 = arith.constant 0 : index
      %12 = vector.load %arg8[%c0_10, %c0_11] : memref<256x128xf32, #tpu.memory_space<vmem>>, vector<256x128xf32>
      %c0_12 = arith.constant 0 : index
      %c0_13 = arith.constant 0 : index
      %13 = vector.load %arg5[%c0_12, %c0_13] : memref<1x128xf32, #tpu.memory_space<vmem>>, vector<1x128xf32>
      %14 = vector.broadcast %13 : vector<1x128xf32> to vector<256x128xf32>
      %15 = arith.mulf %12, %14 : vector<256x128xf32>
      %c0_14 = arith.constant 0 : index
      %c0_15 = arith.constant 0 : index
      %16 = vector.load %arg6[%c0_14, %c0_15] : memref<1x128xf32, #tpu.memory_space<vmem>>, vector<1x128xf32>
      %17 = vector.broadcast %16 : vector<1x128xf32> to vector<256x128xf32>
      %18 = arith.addf %15, %17 : vector<256x128xf32>
      %cst_16 = arith.constant 0.000000e+00 : f32
      %19 = vector.broadcast %cst_16 : f32 to vector<256x128xf32>
      %20 = arith.maximumf %18, %19 : vector<256x128xf32>
      %21 = arith.truncf %20 : vector<256x128xf32> to vector<256x128xbf16>
      %c0_17 = arith.constant 0 : index
      %c0_18 = arith.constant 0 : index
      %22 = vector.load %arg7[%c0_17, %c0_18] : memref<256x128xbf16, #tpu.memory_space<vmem>>, vector<256x128xbf16>
      tpu.vector_store %arg7[%c0_17, %c0_18], %21 {strides = array<i32>} : memref<256x128xbf16, #tpu.memory_space<vmem>>, vector<256x128xbf16>,
    } else {
    }
    return
  }
  func.func @transform_0(%arg0: i32, %arg1: i32, %arg2: i32) -> (i32, i32) {
    %c0_i32 = arith.constant 0 : i32
    return %arg0, %arg2 : i32, i32
  }
  func.func @transform_1(%arg0: i32, %arg1: i32, %arg2: i32) -> (i32, i32) {
    %c0_i32 = arith.constant 0 : i32
    return %arg2, %arg1 : i32, i32
  }
  func.func @transform_2(%arg0: i32, %arg1: i32, %arg2: i32) -> (i32, i32) {
    %c0_i32 = arith.constant 0 : i32
    %c0_i32_0 = arith.constant 0 : i32
    return %c0_i32, %arg1 : i32, i32
  }
  func.func @transform_3(%arg0: i32, %arg1: i32, %arg2: i32) -> (i32, i32) {
    %c0_i32 = arith.constant 0 : i32
    %c0_i32_0 = arith.constant 0 : i32
    return %c0_i32, %arg1 : i32, i32
  }
  func.func @transform_4(%arg0: i32, %arg1: i32, %arg2: i32) -> (i32, i32) {
    %c0_i32 = arith.constant 0 : i32
    return %arg0, %arg1 : i32, i32
  }
}

</mosaic_0001>

<bundles_post_ra>
// kernel: tpu_custom_call.1
= control target key start
LH: loop header
LB: loop body
LE: loop exit
PB: predicated region body
PF: predicated region fallthrough
CT: control target
= control target key end

     0   :  { %9 = vsyncpa [#allocation4], 0  ;;  %s1915_s0 = inlined_call_operand.vmem [shape: bf16[512,27], index: 0, kind: input, shape index: {}]   ;;  %s1916_s1 = inlined_call_operand.vmem [shape: bf16[27,128], index: 1, kind: input, shape index: {}]   ;;  %s1917_s2 = inlined_call_operand.vmem [shape: f32[1,128], index: 2, kind: input, shape index: {}]   ;;  %s1918_s3 = inlined_call_operand.vmem [shape: f32[1,128], index: 3, kind: input, shape index: {}]   ;;  %s1919_s4 = inlined_call_operand.hbm [shape: bf16[512,128], index: 4, kind: output, shape index: {}]  }
   0x1   :  { %11 = vsyncpa [#allocation4 + $0x1], 0  ;;  %s1664_s15 = smov 0   ;;  %s1666_s16 = smov 0  }
   0x2   :  { %s1668_s17 = smov 0   ;;  %s1670_s18 = smov 0  }
   0x3   :  { %s1672_s19 = smov 0   ;;  %s1674_s20 = smov 0  }
   0x4 LB: > { %s1209_s21 = sadd.s32 4294967295, %s1633_s20   ;;  %s1210_s22 = sadd.s32 4294967294, %s1633_s20   ;;  %s1633_s20 = sphi %s1674_s20, %s17_s20   ;;  %s1629_s19 = sphi %s1672_s19, %s1926_s19   ;;  %s1625_s18 = sphi %s1670_s18, %s1925_s18   ;;  %s1621_s17 = sphi %s1668_s17, %s1924_s17   ;;  %s1617_s16 = sphi %s1666_s16, %s1923_s16   ;;  %s1613_s15 = sphi %s1664_s15, %s1922_s15  }
   0x5   : > { %s36_s23 = sadd.s32 1, %s1629_s19  ;;  %s153_s24 = sadd.s32 1, %s1621_s17 }
   0x6   : > { %p38_p0 = scmp.ge.s32.totalorder %s36_s23, 2  ;;  %p163_p1 = scmp.ne.s32.totalorder %s1621_s17, %s1617_s16 }
   0x7   : > { %p164_p2 = scmp.eq.s32.totalorder %s1209_s21, 1  ;;  %p169_p3 = scmp.ne.s32.totalorder %s1617_s16, %s1613_s15 }
   0x8   : > { %s1928_s23 = smov (%p38_p0, %s36_s23), 0  ;;  %p170_p5 = scmp.eq.s32.totalorder %s1210_s22, 1 }
   0x9   : > { %p1704_p4 = por %p164_p2, %p163_p1  ;;  %s148_s26 = ssub.s32 %s1629_s19, %s1928_s23 }
   0xa   : > { %p1216_p6 = scmp.ge.s32.totalorder %s1633_s20, 1  ;;  %p151_p7 = scmp.eq.s32.totalorder %s148_s26, 0 }
   0xb   : > { %p1711_p8 = por %p170_p5, %p169_p3  ;;  %p224_p9 = scmp.lt.s32.totalorder %s1633_s20, 3 }
   0xc   : > { %s1717_s28 = scalar_select %p151_p7, %s1621_s17, %s153_s24  }
   0xd   : > { %p225_p10 = pnand %p1216_p6, %p224_p9 }
   0xe   : > { %v1537_v0 = vld [vmem:[%s1916_s1] sm:$0xff] (!%p225_p10)   ;;  %vm537_vm0 = vcmask (!%p225_p10), 1044480   ;;  %v1538_v1 = vld [vmem:[%s1916_s1 + $0x8] sm:$0x3f] (!%p225_p10)   ;;  %vm538_vm1 = vcmask (!%p225_p10), 1045504   ;;  %s1218_s7 = sshll.u32 (!%p225_p10), %s1625_s18, 5 }
   0xf   : > { %228 = sbr.rel (%p225_p10) target bundleno = 291 (0x123), region = 36  ;;  %1439 = vmatprep.subr.bf16.mxu0 (!%p225_p10), %v1537_v0  ;;  %1475 = vmatprep.subr.bf16.mxu1 (!%p225_p10), %v1537_v0  ;;  %v1635_v2 = vmov (!%p225_p10), 65535   ;;  %p268_p11 = scmp.lt.s32.totalorder (!%p225_p10), %s1218_s7, 63  ;;  %vm488_vm2 = vcmask (!%p225_p10), 220160   ;;  %v1766_v22 = vld [vmem:[%s1917_s2] ss:$0 sm:$0xff] (!%p225_p10) }
  0x10   : > { %1440 = vmatpush3.bf16.msra.mxu0 (!%p225_p10), %v1537_v0  ;;  %1477 = vmatpush3.bf16.msra.mxu1 (!%p225_p10), %v1537_v0  ;;  %v539_v3 = vsel (!%p225_p10), %vm537_vm0, 4294967295, %v1635_v2  ;;  %v1771_v24 = vld [vmem:[%s1918_s3] ss:$0 sm:$0xff] (!%p225_p10)  ;;  %s264_s22 = sand.u32 (!%p225_p10), 1, %s1617_s16   ;;  %s1325_s29 = sshll.u32 (!%p225_p10), %s1625_s18, 11 }
  0x11   : > { %v540_v4 = vsel (!%p225_p10), %vm538_vm1, %v539_v3, 0  ;;  %s1217_s24 = sshll.u32 (!%p225_p10), %s264_s22, 7  ;;  %s1869_s18 = scalar_lea.sflag (!%p225_p10), [#allocation4], %s264_s22 }
  0x12   : > { %v542_v5 = vand.u32 (!%p225_p10), %v1538_v1, %v540_v4  ;;  %s1795_s26 = scalar_lea.vmem (!%p225_p10), [#allocation3], %s1217_s24  ;;  %s1636_s9 = smov (!%p225_p10), [#allocation3]  }
  0x13   : > { %s1089_s30 = sshll.u32 (!%p225_p10), %s1795_s26, 4  ;;  %s1559_s10 = sshll.u32 (!%p225_p10), %s1636_s9, 4  ;;  %s1861_s30 = int_to_ptr.vmem [resolvable:$true] %s1089_s30  ;;  %s1560_s10 = int_to_ptr.vmem [resolvable:$false] %s1559_s10 }
  0x14   : > { %1441 = vmatprep.subr.bf16.mxu0 (!%p225_p10), %v542_v5  ;;  %1476 = vmatprep.subr.bf16.mxu1 (!%p225_p10), %v542_v5  ;;  %p1562_p1 = scmp.lt.s32.totalorder (!%p225_p10), %s1861_s30, %s1560_s10 }
  0x15   : > { %1442 = vmatpush3.bf16.msra.mxu0 (!%p225_p10), %v542_v5  ;;  %1478 = vmatpush3.bf16.msra.mxu1 (!%p225_p10), %v542_v5 }
  0x16   : > { %s1930_s7 = smov (!%p268_p11, %s1218_s7), 63 }
  0x17   : > { %s1219_s8 = sshll.u32 %s1930_s7, 2  ;;  %s1859_s7 = scalar_lea.hbm %s1919_s4, %s1325_s29 }
  0x18   : > { %s1729_s11 = scalar_lea.vmem %s1915_s0, %s1219_s8  ;;  %s1555_s8 = scalar_lea.vmem %s1861_s30, 2048 }
  0x19   : > { %v1539_v6 = vld [vmem:[%s1729_s11] sm:$0xff]   ;;  %v1541_v8 = vld [vmem:[%s1729_s11 + $0x8] sm:$0xff]   ;;  %v1543_v10 = vld [vmem:[%s1729_s11 + $0x10] sm:$0xff]   ;;  %p1556_p12 = scmp.ne.s32.totalorder %s1861_s30, %s1555_s8 }
  0x1a   : > { %v1540_v7 = vld [vmem:[%s1729_s11 + $0x40] sm:$0xff]   ;;  %1443 = vmatprep.mubr.msk.bf16.mxu0 %vm488_vm2, %v1539_v6  ;;  %v1542_v9 = vld [vmem:[%s1729_s11 + $0x48] sm:$0xff]   ;;  %v1544_v11 = vld [vmem:[%s1729_s11 + $0x50] sm:$0xff]  }
  0x1b   : > { %1459 = vmatprep.mubr.msk.bf16.mxu1 %vm488_vm2, %v1540_v7  ;;  %1444 = vmatmul.mubr.msk.bf16.vlgmr.msra.gmra.mrb[0].mxu0 %vm488_vm2, %v1541_v8  ;;  %v1545_v12 = vld [vmem:[%s1729_s11 + $0x18] sm:$0xff]   ;;  %v1547_v14 = vld [vmem:[%s1729_s11 + $0x20] sm:$0xff]   ;;  %v1549_v16 = vld [vmem:[%s1729_s11 + $0x28] sm:$0xff]   ;;  %p1557_p13 = pnand %p1556_p12, %p1704_p4 }
  0x1c   : > { %1460 = vmatmul.mubr.msk.bf16.vlgmr.msra.gmra.mrb[0].mxu1 %vm488_vm2, %v1542_v9  ;;  %1447 = vmatprep.mubr.msk.bf16.mxu0 %vm488_vm2, %v1543_v10  ;;  %v1546_v13 = vld [vmem:[%s1729_s11 + $0x58] sm:$0xff]   ;;  %v1548_v15 = vld [vmem:[%s1729_s11 + $0x60] sm:$0xff]   ;;  %v1550_v17 = vld [vmem:[%s1729_s11 + $0x68] sm:$0xff]  }
  0x1d   : > { %1463 = vmatprep.mubr.msk.bf16.mxu1 %vm488_vm2, %v1544_v11  ;;  %v1551_v18 = vld [vmem:[%s1729_s11 + $0x30] sm:$0xff]   ;;  %v1553_v20 = vld [vmem:[%s1729_s11 + $0x38] sm:$0xff]   ;;  %p1558_p0 = pneg %p1557_p13 }
  0x1e   : > { %v1552_v19 = vld [vmem:[%s1729_s11 + $0x70] sm:$0xff]   ;;  %v1554_v21 = vld [vmem:[%s1729_s11 + $0x78] sm:$0xff]   ;;  %s1561_s11 = scalar_lea.vmem %s1560_s10, 4096 }
  0x1f   : > { %p1563_p2 = scmp.lt.s32.totalorder %s1561_s11, %s1555_s8 }
  0x21   : > { %p1564_p3 = por %p1563_p2, %p1562_p1 }
  0x23   : > { %1448 = vmatmul.mubr.msk.bf16.gmra.mrb[4].mxu0 %vm488_vm2, %v1545_v12  ;;  %p1565_p5 = pnand %p1564_p3, %p1558_p0 }
  0x24   : > { %1464 = vmatmul.mubr.msk.bf16.gmra.mrb[4].mxu1 %vm488_vm2, %v1546_v13  ;;  %1451 = vmatprep.mubr.msk.bf16.mxu0 %vm488_vm2, %v1547_v14 }
  0x25   : > { %1467 = vmatprep.mubr.msk.bf16.mxu1 %vm488_vm2, %v1548_v15 }
  0x2b   : > { %1452 = vmatmul.mubr.msk.bf16.gmra.mrb[8].mxu0 %vm488_vm2, %v1549_v16 }
  0x2c   : > { %1468 = vmatmul.mubr.msk.bf16.gmra.mrb[8].mxu1 %vm488_vm2, %v1550_v17  ;;  %1455 = vmatprep.mubr.msk.bf16.mxu0 %vm488_vm2, %v1551_v18 }
  0x2d   : > { %1471 = vmatprep.mubr.msk.bf16.mxu1 %vm488_vm2, %v1552_v19 }
  0x33   : > { %1456 = vmatmul.mubr.msk.bf16.gmra.mrb[12].mxu0 %vm488_vm2, %v1553_v20 }
  0x34   : > { %1472 = vmatmul.mubr.msk.bf16.gmra.mrb[12].mxu1 %vm488_vm2, %v1554_v21 }
  0xee   : > { %v1445_v23 = vpop.f32.mrb[0].mxu0 }
  0xef   : > { %v813_v25 = vmul.f32 %v1445_v23, %v1766_v22  ;;  %v1461_v26 = vpop.f32.mrb[0].mxu1  ;;  %v578_v27 = vpop.f32.mrb[1].mxu0 }
  0xf0   : > { %v829_v28 = vmul.f32 %v1461_v26, %v1766_v22  ;;  %v811_v29 = vmul.f32 %v1766_v22, %v578_v27  ;;  %v642_v30 = vpop.f32.mrb[1].mxu1  ;;  %v1446_v31 = vpop.f32.mrb[2].mxu0 }
  0xf1   : > { %v852_v32 = vadd.f32 %v1771_v24, %v813_v25  ;;  %v827_v33 = vmul.f32 %v1766_v22, %v642_v30  ;;  %v814_v34 = vmul.f32 %v1446_v31, %v1766_v22  ;;  %v1462_v35 = vpop.f32.mrb[2].mxu1  ;;  %v581_v36 = vpop.f32.mrb[3].mxu0 }
  0xf2   : > { %v868_v37 = vadd.f32 %v1771_v24, %v829_v28  ;;  %v850_v38 = vadd.f32 %v1771_v24, %v811_v29  ;;  %v830_v39 = vmul.f32 %v1462_v35, %v1766_v22  ;;  %v812_v40 = vmul.f32 %v1766_v22, %v581_v36  ;;  %v645_v41 = vpop.f32.mrb[3].mxu1 }
  0xf3   : > { %v866_v42 = vadd.f32 %v1771_v24, %v827_v33  ;;  %v853_v43 = vadd.f32 %v1771_v24, %v814_v34  ;;  %v828_v44 = vmul.f32 %v1766_v22, %v645_v41  ;;  %v884_v47 = vmax.f32 %v852_v32, 0.0 }
  0xf4   : > { %v869_v45 = vadd.f32 %v1771_v24, %v830_v39  ;;  %v851_v46 = vadd.f32 %v1771_v24, %v812_v40  ;;  %v900_v50 = vmax.f32 %v868_v37, 0.0  ;;  %v882_v51 = vmax.f32 %v850_v38, 0.0 }
  0xf5   : > { %v885_v48 = vmax.f32 %v853_v43, 0.0  ;;  %v867_v49 = vadd.f32 %v1771_v24, %v828_v44  ;;  %v898_v55 = vmax.f32 %v866_v42, 0.0 }
  0xf6   : > { %v901_v52 = vmax.f32 %v869_v45, 0.0  ;;  %v883_v53 = vmax.f32 %v851_v46, 0.0  ;;  %v1449_v54 = vpop.f32.mrb[4].mxu0 }
  0xf7   : > { %v1334_v56 = vpack.c.bf16 %v885_v48, %v884_v47  ;;  %v899_v57 = vmax.f32 %v867_v49, 0.0  ;;  %v817_v58 = vmul.f32 %v1449_v54, %v1766_v22  ;;  %v1465_v59 = vpop.f32.mrb[4].mxu1  ;;  %v594_v60 = vpop.f32.mrb[5].mxu0 }
  0xf8   : > { %v1374_v61 = vpack.c.bf16 %v901_v52, %v900_v50  ;;  %v1329_v62 = vpack.c.bf16 %v883_v53, %v882_v51  ;;  %v833_v63 = vmul.f32 %v1465_v59, %v1766_v22  ;;  %v815_v0 = vmul.f32 %v1766_v22, %v594_v60  ;;  %v658_v1 = vpop.f32.mrb[5].mxu1  ;;  %v1450_v2 = vpop.f32.mrb[6].mxu0 }
  0xf9   : > { %1406 = vst [vmem:[%s1795_s26 + $0x8] sm:$0xff] %v1334_v56   ;;  %v1369_v3 = vpack.c.bf16 %v899_v57, %v898_v55  ;;  %v856_v4 = vadd.f32 %v1771_v24, %v817_v58  ;;  %v831_v5 = vmul.f32 %v1766_v22, %v658_v1  ;;  %v818_v6 = vmul.f32 %v1450_v2, %v1766_v22  ;;  %v1466_v7 = vpop.f32.mrb[6].mxu1  ;;  %v597_v8 = vpop.f32.mrb[7].mxu0 }
  0xfa   : > { %1414 = vst [vmem:[%s1795_s26 + $0x48] sm:$0xff] %v1374_v61   ;;  %1330 = vst [vmem:[%s1795_s26] sm:$0xff] %v1329_v62   ;;  %v872_v9 = vadd.f32 %v1771_v24, %v833_v63  ;;  %v854_v10 = vadd.f32 %v1771_v24, %v815_v0  ;;  %v834_v11 = vmul.f32 %v1466_v7, %v1766_v22  ;;  %v661_v13 = vpop.f32.mrb[7].mxu1 }
  0xfb   : > { %v816_v12 = vmul.f32 %v1766_v22, %v597_v8  ;;  %1413 = vst [vmem:[%s1795_s26 + $0x40] sm:$0xff] %v1369_v3   ;;  %v870_v14 = vadd.f32 %v1771_v24, %v831_v5  ;;  %v857_v15 = vadd.f32 %v1771_v24, %v818_v6  ;;  %v832_v16 = vmul.f32 %v1766_v22, %v661_v13 }
  0xfc   : > { %v873_v17 = vadd.f32 %v1771_v24, %v834_v11  ;;  %v888_v19 = vmax.f32 %v856_v4, 0.0  ;;  %v904_v23 = vmax.f32 %v872_v9, 0.0  ;;  %v886_v25 = vmax.f32 %v854_v10, 0.0 }
  0xfd   : > { %v855_v18 = vadd.f32 %v1771_v24, %v816_v12  ;;  %v889_v20 = vmax.f32 %v857_v15, 0.0  ;;  %v871_v21 = vadd.f32 %v1771_v24, %v832_v16  ;;  %v902_v29 = vmax.f32 %v870_v14, 0.0 }
  0xfe   : > { %v905_v26 = vmax.f32 %v873_v17, 0.0  ;;  %v1453_v28 = vpop.f32.mrb[8].mxu0 }
  0xff   : > { %v887_v27 = vmax.f32 %v855_v18, 0.0  ;;  %v1344_v30 = vpack.c.bf16 %v889_v20, %v888_v19  ;;  %v903_v31 = vmax.f32 %v871_v21, 0.0  ;;  %v821_v32 = vmul.f32 %v1453_v28, %v1766_v22  ;;  %v1469_v33 = vpop.f32.mrb[8].mxu1  ;;  %v610_v34 = vpop.f32.mrb[9].mxu0 }
 0x100   : > { %v1384_v35 = vpack.c.bf16 %v905_v26, %v904_v23  ;;  %v837_v37 = vmul.f32 %v1469_v33, %v1766_v22  ;;  %v819_v38 = vmul.f32 %v1766_v22, %v610_v34  ;;  %v674_v39 = vpop.f32.mrb[9].mxu1  ;;  %v1454_v40 = vpop.f32.mrb[10].mxu0 }
 0x101   : > { %v1339_v36 = vpack.c.bf16 %v887_v27, %v886_v25  ;;  %1408 = vst [vmem:[%s1795_s26 + $0x18] sm:$0xff] %v1344_v30   ;;  %v1379_v41 = vpack.c.bf16 %v903_v31, %v902_v29  ;;  %v860_v42 = vadd.f32 %v1771_v24, %v821_v32  ;;  %v835_v43 = vmul.f32 %v1766_v22, %v674_v39  ;;  %v1470_v45 = vpop.f32.mrb[10].mxu1  ;;  %v613_v46 = vpop.f32.mrb[11].mxu0 }
 0x102   : > { %v822_v44 = vmul.f32 %v1454_v40, %v1766_v22  ;;  %1416 = vst [vmem:[%s1795_s26 + $0x58] sm:$0xff] %v1384_v35   ;;  %v876_v47 = vadd.f32 %v1771_v24, %v837_v37  ;;  %v858_v48 = vadd.f32 %v1771_v24, %v819_v38  ;;  %v838_v49 = vmul.f32 %v1470_v45, %v1766_v22  ;;  %v677_v51 = vpop.f32.mrb[11].mxu1 }
 0x103   : > { %1407 = vst [vmem:[%s1795_s26 + $0x10] sm:$0xff] %v1339_v36   ;;  %v820_v50 = vmul.f32 %v1766_v22, %v613_v46  ;;  %1415 = vst [vmem:[%s1795_s26 + $0x50] sm:$0xff] %v1379_v41   ;;  %v874_v52 = vadd.f32 %v1771_v24, %v835_v43  ;;  %v836_v54 = vmul.f32 %v1766_v22, %v677_v51  ;;  %v892_v57 = vmax.f32 %v860_v42, 0.0 }
 0x104   : > { %v861_v53 = vadd.f32 %v1771_v24, %v822_v44  ;;  %v877_v55 = vadd.f32 %v1771_v24, %v838_v49  ;;  %v908_v60 = vmax.f32 %v876_v47, 0.0  ;;  %v890_v61 = vmax.f32 %v858_v48, 0.0 }
 0x105   : > { %v859_v56 = vadd.f32 %v1771_v24, %v820_v50  ;;  %v875_v59 = vadd.f32 %v1771_v24, %v836_v54  ;;  %v906_v1 = vmax.f32 %v874_v52, 0.0 }
 0x106   : > { %v893_v58 = vmax.f32 %v861_v53, 0.0  ;;  %v909_v62 = vmax.f32 %v877_v55, 0.0  ;;  %v1457_v0 = vpop.f32.mrb[12].mxu0 }
 0x107   : > { %v891_v63 = vmax.f32 %v859_v56, 0.0  ;;  %v907_v3 = vmax.f32 %v875_v59, 0.0  ;;  %v825_v4 = vmul.f32 %v1457_v0, %v1766_v22  ;;  %v1473_v5 = vpop.f32.mrb[12].mxu1  ;;  %v626_v6 = vpop.f32.mrb[13].mxu0 }
 0x108   : > { %v1354_v2 = vpack.c.bf16 %v893_v58, %v892_v57  ;;  %v1394_v7 = vpack.c.bf16 %v909_v62, %v908_v60  ;;  %v841_v9 = vmul.f32 %v1473_v5, %v1766_v22  ;;  %v823_v10 = vmul.f32 %v1766_v22, %v626_v6  ;;  %v690_v11 = vpop.f32.mrb[13].mxu1  ;;  %v1458_v12 = vpop.f32.mrb[14].mxu0 }
 0x109   : > { %v1349_v8 = vpack.c.bf16 %v891_v63, %v890_v61  ;;  %v1389_v13 = vpack.c.bf16 %v907_v3, %v906_v1  ;;  %v864_v14 = vadd.f32 %v1771_v24, %v825_v4  ;;  %v839_v15 = vmul.f32 %v1766_v22, %v690_v11  ;;  %v1474_v17 = vpop.f32.mrb[14].mxu1  ;;  %v629_v18 = vpop.f32.mrb[15].mxu0 }
 0x10a   : > { %1410 = vst [vmem:[%s1795_s26 + $0x28] sm:$0xff] %v1354_v2   ;;  %v826_v16 = vmul.f32 %v1458_v12, %v1766_v22  ;;  %1418 = vst [vmem:[%s1795_s26 + $0x68] sm:$0xff] %v1394_v7   ;;  %v880_v19 = vadd.f32 %v1771_v24, %v841_v9  ;;  %v862_v20 = vadd.f32 %v1771_v24, %v823_v10  ;;  %v693_v25 = vpop.f32.mrb[15].mxu1 }
 0x10b   : > { %1409 = vst [vmem:[%s1795_s26 + $0x20] sm:$0xff] %v1349_v8   ;;  %v842_v21 = vmul.f32 %v1474_v17, %v1766_v22  ;;  %v824_v23 = vmul.f32 %v1766_v22, %v629_v18  ;;  %1417 = vst [vmem:[%s1795_s26 + $0x60] sm:$0xff] %v1389_v13   ;;  %v878_v26 = vadd.f32 %v1771_v24, %v839_v15  ;;  %v896_v31 = vmax.f32 %v864_v14, 0.0 }
 0x10c   : > { %v865_v27 = vadd.f32 %v1771_v24, %v826_v16  ;;  %v840_v28 = vmul.f32 %v1766_v22, %v693_v25  ;;  %v912_v34 = vmax.f32 %v880_v19, 0.0  ;;  %v894_v35 = vmax.f32 %v862_v20, 0.0 }
 0x10d   : > { %v881_v29 = vadd.f32 %v1771_v24, %v842_v21  ;;  %v863_v30 = vadd.f32 %v1771_v24, %v824_v23  ;;  %v910_v22 = vmax.f32 %v878_v26, 0.0 }
 0x10e   : > { %v897_v32 = vmax.f32 %v865_v27, 0.0  ;;  %v879_v33 = vadd.f32 %v1771_v24, %v840_v28 }
 0x10f   : > { %v913_v36 = vmax.f32 %v881_v29, 0.0  ;;  %v895_v37 = vmax.f32 %v863_v30, 0.0 }
 0x110   : > { %v1364_v38 = vpack.c.bf16 %v897_v32, %v896_v31  ;;  %v911_v39 = vmax.f32 %v879_v33, 0.0 }
 0x111   : > { %v1404_v40 = vpack.c.bf16 %v913_v36, %v912_v34  ;;  %v1359_v41 = vpack.c.bf16 %v895_v37, %v894_v35 }
 0x112   : > { %1412 = vst [vmem:[%s1795_s26 + $0x38] sm:$0xff] %v1364_v38   ;;  %v1399_v24 = vpack.c.bf16 %v911_v39, %v910_v22 }
 0x113   : > { %1420 = vst [vmem:[%s1795_s26 + $0x78] sm:$0xff] %v1404_v40   ;;  %1411 = vst [vmem:[%s1795_s26 + $0x30] sm:$0xff] %v1359_v41  }
 0x114   : > { %1419 = vst [vmem:[%s1795_s26 + $0x70] sm:$0xff] %v1399_v24  }
 0x115   : > { %1568 = shalt.err (!%p1565_p5)
}
 0x116   : > { %s1569_s12 = scalar_lea.hbm %s1859_s7, 2048  ;;  %s1573_s21 = scalar_lea.hbm %s1919_s4, 4096 }
 0x117   : > { %p1570_p6 = scmp.ne.s32.totalorder %s1859_s7, %s1569_s12  ;;  %p1574_p10 = scmp.lt.u32.totalorder %s1859_s7, %s1919_s4 }
 0x118   : > { %p1575_p11 = scmp.lt.u32.totalorder %s1573_s21, %s1569_s12  ;;  %p1577_p13 = scmp.lt.u32.totalorder %s1569_s12, %s1859_s7 }
 0x119   : > { %p1571_p7 = pnand %p1570_p6, %p1704_p4 }
 0x11a   : > { %p1576_p12 = por %p1575_p11, %p1574_p10 }
 0x11b   : > { %p1572_p9 = pneg %p1571_p7 }
 0x11c   : > { %p1578_p0 = por %p1577_p13, %p1576_p12 }
 0x11e   : > { %p1579_p1 = pnand %p1578_p0, %p1572_p9 }
 0x120   : > { %1582 = shalt.err (!%p1579_p1)
}
 0x121   : > { %s1637_s26 = smov 64   ;;  %s1638_s29 = smov 4  }
 0x122   : > { %1479 = dma.vmem_to_hbm [thread:$0]  (%p1704_p4), %s1861_s30, 2048, %s1859_s7, %s1869_s18, %s1637_s26, %s1637_s26, %s1638_s29  }
 0x123 PF: > { %p1485_p2 = scmp.ge.s32.totalorder %s1633_s20, 2  ;;  %s1104_s5 = sand.u32 1, %s1613_s15  }
 0x124   : > { %s1105_s6 = scalar_lea.sflag [#allocation4], %s1104_s5 }
 0x125   : > { %p1482_p3 = pnand %p1485_p2, %p1711_p8 }
 0x127   : > { %1608 = dma.done.wait (!%p1482_p3), %s1105_s6, 2048  }
 0x128   : > { %1610 = vsyncadd (!%p1482_p3), %s1105_s6, 4294965248  ;;  %s17_s20 = sadd.s32 1, %s1633_s20   ;;  %s1922_s15 = smov %s1617_s16 }
 0x129   : > { %p14_p5 = scmp.ge.s32.totalorder %s17_s20, 4   ;;  %s1923_s16 = smov %s1621_s17 }
 0x12a   : > { %s1924_s17 = smov %s1717_s28  ;;  %s1925_s18 = smov %s1629_s19 }
 0x12b   : > { %s1926_s19 = smov %s1928_s23  ;;  %16 = sbr.rel (!%p14_p5) target bundleno = 4 (0x4), region = 88 }
 0x132   :  { %1110 = vsyncpa [#allocation4], 1 }
 0x133   :  { %1112 = vsyncpa [#allocation4 + $0x1], 1 }

</bundles_post_ra>
